<compile_context>
chip_gen: v6e
topology: v6e:2x2x1
jax: 0.10.0
libtpu: 0.0.40
codegen_flags: <defaults>
</compile_context>

<pallas_src>
import functools

import jax
import jax.numpy as jnp
from jax.experimental import pallas as pl
from jax.experimental.pallas import tpu as pltpu

_LANES = 128
_SUB = 8


def _ceil_to(x, m):
    return -(-x // m) * m


# ----------------------------------------------------------------------------
# Kernel 1: streaming L2SP reduction over the live / pretrained parameter slabs
# ----------------------------------------------------------------------------
def _l2sp_stream_kernel(cur_ref, pre_ref, out_ref, sp_acc_ref, l2_acc_ref,
                        *, nb_tiles, steps_per_core):
    c = pl.program_id(0)          # core ("parallel") axis
    i = pl.program_id(1)          # sequential streaming axis

    @pl.when(i == 0)
    def _init():
        sp_acc_ref[...] = jnp.zeros_like(sp_acc_ref)
        l2_acc_ref[...] = jnp.zeros_like(l2_acc_ref)

    d = cur_ref[...].astype(jnp.float32) - pre_ref[...].astype(jnp.float32)
    # (tile_rows, 128) -> (tile_rows//8, 8, 128) is a free major-dim split; reducing
    # axis 0 is pure VPU vreg adds -> no per-step cross-lane XLU work.
    part = jnp.sum((d * d).reshape(-1, _SUB, _LANES), axis=0)

    gidx = c * steps_per_core + i          # global tile index
    # Backbone / head boundary is tile-aligned -> route the whole tile with pl.when.
    @pl.when(gidx < nb_tiles)
    def _backbone():
        sp_acc_ref[...] += part

    @pl.when(gidx >= nb_tiles)
    def _head():
        l2_acc_ref[...] += part

    @pl.when(i == steps_per_core - 1)
    def _emit():
        sp = jnp.sum(sp_acc_ref[...])      # single cross-lane collapse per core
        l2 = jnp.sum(l2_acc_ref[...])
        lane = jax.lax.broadcasted_iota(jnp.int32, out_ref.shape, 1)
        out_ref[...] = jnp.where(lane == 0, sp, 0.0) + jnp.where(lane == 1, l2, 0.0)


# ----------------------------------------------------------------------------
# Kernel 2: triplet-margin loss (batch-tiled, bounded VMEM residency)
# ----------------------------------------------------------------------------
def _triplet_kernel(a_ref, p_ref, n_ref, out_ref, acc_ref,
                    *, batch, d_valid, margin, eps, tile_b):
    i = pl.program_id(0)

    @pl.when(i == 0)
    def _init():
        acc_ref[...] = jnp.zeros_like(acc_ref)

    a = a_ref[...].astype(jnp.float32)
    p = p_ref[...].astype(jnp.float32)
    n = n_ref[...].astype(jnp.float32)
    lane = jax.lax.broadcasted_iota(jnp.int32, a.shape, 1)
    lane_ok = lane < d_valid
    # torch.nn.functional.pairwise_distance: ||x1 - x2 + eps||_2 (eps added per element)
    dap = jnp.where(lane_ok, a - p + eps, 0.0)
    dan = jnp.where(lane_ok, a - n + eps, 0.0)
    d_ap = jnp.sqrt(jnp.sum(dap * dap, axis=1, keepdims=True))   # (tile_b, 1)
    d_an = jnp.sqrt(jnp.sum(dan * dan, axis=1, keepdims=True))

    row = i * tile_b + jax.lax.broadcasted_iota(jnp.int32, d_ap.shape, 0)
    row_ok = row < batch
    hinge = jnp.maximum(d_ap - d_an + margin, 0.0)
    h_sum = jnp.sum(jnp.where(row_ok, hinge, 0.0))
    ap_sum = jnp.sum(jnp.where(row_ok, d_ap, 0.0))
    an_sum = jnp.sum(jnp.where(row_ok, d_an, 0.0))

    lane8 = jax.lax.broadcasted_iota(jnp.int32, acc_ref.shape, 1)
    acc_ref[...] += (jnp.where(lane8 == 0, h_sum, 0.0)
                     + jnp.where(lane8 == 1, ap_sum, 0.0)
                     + jnp.where(lane8 == 2, an_sum, 0.0))

    @pl.when(i == pl.num_programs(0) - 1)
    def _emit():
        out_ref[...] = acc_ref[...]


# ----------------------------------------------------------------------------
# Host-side helpers
# ----------------------------------------------------------------------------
def _device_plan(itemsize):
    """Per-generation (num_cores, streaming tile rows, VMEM cap)."""
    kind = jax.devices()[0].device_kind.lower()
    if "v7" in kind:
        num_cores, buf_bytes, vmem_cap = 2, 8 << 20, 48 << 20    # 64 MiB physical VMEM
    elif "v6" in kind:
        num_cores, buf_bytes, vmem_cap = 1, 8 << 20, 100 << 20
    elif "v5" in kind:
        num_cores, buf_bytes, vmem_cap = 1, 4 << 20, 100 << 20
    else:
        num_cores, buf_bytes, vmem_cap = 1, 4 << 20, 48 << 20
    target_rows = max(_SUB, (buf_bytes // (_LANES * itemsize)) // _SUB * _SUB)
    return num_cores, target_rows, vmem_cap


def _region_slab(params, rows, dtype):
    """Flatten a list of arrays, zero-pad to rows*128 and reshape (rows, 128)."""
    if rows == 0:
        return jnp.zeros((0, _LANES), dtype)
    if params:
        flat = jnp.concatenate([jnp.ravel(p).astype(dtype) for p in params])
    else:
        flat = jnp.zeros((0,), dtype)
    flat = jnp.pad(flat, (0, rows * _LANES - flat.shape[0]))
    return flat.reshape(rows, _LANES)


def _forward_impl(anchor, positive, negative, cur_slab, pre_slab, *,
                  nb_tiles, steps_per_core, num_cores, tile_rows,
                  alpha, beta, margin, eps, vmem_limit):
    # ---------------- streaming L2SP reduction (2N HBM bytes) ----------------
    itemsize = jnp.dtype(cur_slab.dtype).itemsize
    n_elems = int(cur_slab.size)
    l2sp_cost = pl.CostEstimate(flops=3 * n_elems, transcendentals=0,
                                bytes_accessed=2 * n_elems * itemsize + 1024)
    partials = pl.pallas_call(
        functools.partial(_l2sp_stream_kernel, nb_tiles=nb_tiles,
                          steps_per_core=steps_per_core),
        out_shape=jax.ShapeDtypeStruct((num_cores * _SUB, _LANES), jnp.float32),
        grid_spec=pltpu.PrefetchScalarGridSpec(
            num_scalar_prefetch=0,
            grid=(num_cores, steps_per_core),
            in_specs=[
                pl.BlockSpec((tile_rows, _LANES),
                             lambda c, i: (c * steps_per_core + i, 0)),
                pl.BlockSpec((tile_rows, _LANES),
                             lambda c, i: (c * steps_per_core + i, 0)),
            ],
            out_specs=pl.BlockSpec((_SUB, _LANES), lambda c, i: (c, 0)),
            scratch_shapes=[pltpu.VMEM((_SUB, _LANES), jnp.float32),
                            pltpu.VMEM((_SUB, _LANES), jnp.float32)],
        ),
        compiler_params=pltpu.CompilerParams(
            dimension_semantics=("parallel", "arbitrary"),
            vmem_limit_bytes=vmem_limit),
        cost_estimate=l2sp_cost,
    )(cur_slab, pre_slab)
    pr = partials.reshape(num_cores, _SUB, _LANES)
    sp_sum = jnp.sum(pr[:, 0, 0])
    l2_sum = jnp.sum(pr[:, 0, 1])
    l2sp = alpha * sp_sum + beta * l2_sum

    # ---------------- triplet-margin loss (tiny, separate call) ---------------
    B, D = anchor.shape
    Dp = _ceil_to(D, _LANES)
    Bp = _ceil_to(B, _SUB)
    tile_b = Bp if Bp <= 256 else 256
    Bp = _ceil_to(Bp, tile_b)
    pad = ((0, Bp - B), (0, Dp - D))
    a = jnp.pad(anchor, pad)
    p = jnp.pad(positive, pad)
    n = jnp.pad(negative, pad)
    trip_cost = pl.CostEstimate(flops=10 * Bp * Dp, transcendentals=2 * Bp,
                                bytes_accessed=3 * Bp * Dp * 4 + 1024)
    sums = pl.pallas_call(
        functools.partial(_triplet_kernel, batch=B, d_valid=D, margin=margin,
                          eps=eps, tile_b=tile_b),
        out_shape=jax.ShapeDtypeStruct((_SUB, _LANES), jnp.float32),
        grid_spec=pltpu.PrefetchScalarGridSpec(
            num_scalar_prefetch=0,
            grid=(Bp // tile_b,),
            in_specs=[pl.BlockSpec((tile_b, Dp), lambda i: (i, 0)),
                      pl.BlockSpec((tile_b, Dp), lambda i: (i, 0)),
                      pl.BlockSpec((tile_b, Dp), lambda i: (i, 0))],
            out_specs=pl.BlockSpec((_SUB, _LANES), lambda i: (0, 0)),
            scratch_shapes=[pltpu.VMEM((_SUB, _LANES), jnp.float32)],
        ),
        compiler_params=pltpu.CompilerParams(dimension_semantics=("arbitrary",)),
        cost_estimate=trip_cost,
    )(a, p, n)
    inv_b = 1.0 / B
    std_loss = sums[0, 0] * inv_b
    dap_mean = sums[0, 1] * inv_b
    dan_mean = sums[0, 2] * inv_b
    return std_loss + l2sp, dap_mean, dan_mean, l2sp


# ----------------------------------------------------------------------------
# Wrapper reproducing L2SPRegularization_Wrapper.forward
# ----------------------------------------------------------------------------
class L2SPRegularizationWrapperPallas:
    def __init__(self, model_params, pretrained_params, head_params, alpha, beta,
                 margin=1.0, eps=1e-6, log_func=lambda name, value: None):
        assert pretrained_params is not None, "pretrained weights must be provided"
        self.log = log_func

        model_params = list(model_params)
        head_params = list(head_params)
        pretrained_params = list(pretrained_params)

        # Single slab dtype = promoted dtype of all params so a mixed f32 head next to
        # a bf16 backbone keeps beta*||w_head||^2 exact.
        all_p = model_params + head_params + pretrained_params
        slab_dtype = (jnp.result_type(*[p.dtype for p in all_p]) if all_p
                      else jnp.float32)
        itemsize = jnp.dtype(slab_dtype).itemsize

        num_cores, target_rows, vmem_cap = _device_plan(itemsize)
        nb_rows = _ceil_to(sum(int(p.size) for p in model_params), _LANES) // _LANES
        nh_rows = _ceil_to(sum(int(p.size) for p in head_params), _LANES) // _LANES
        tile_rows = min(target_rows,
                        max(_SUB, _ceil_to(max(nb_rows, nh_rows, 1), _SUB)))
        nb_tiles = -(-nb_rows // tile_rows)
        nh_tiles = -(-nh_rows // tile_rows)
        total_tiles = max(num_cores, _ceil_to(nb_tiles + nh_tiles, num_cores))
        steps_per_core = total_tiles // num_cores

        self._pack_cfg = (nb_tiles * tile_rows, nh_tiles * tile_rows,
                          total_tiles * tile_rows, slab_dtype)

        # Flat slabs are the canonical storage: built ONCE, never re-materialized per
        # call.  The kernel therefore streams exactly 2N bytes of HBM per forward.
        # TODO(synk): optionally stream native-pytree params via pl.ANY + scalar
        # prefetch schedule + manual make_async_copy to avoid even this flat layout.
        pre = _region_slab(pretrained_params, nb_tiles * tile_rows, slab_dtype)
        self._pre_slab = jnp.concatenate(
            [pre, jnp.zeros(((total_tiles - nb_tiles) * tile_rows, _LANES),
                            slab_dtype)], axis=0)
        self._cur_slab = self._pack_live(model_params, head_params)

        stream_bytes = tile_rows * _LANES * itemsize
        vmem_limit = int(min(vmem_cap, 2 * 2 * stream_bytes + (8 << 20)))

        self._forward = jax.jit(functools.partial(
            _forward_impl, nb_tiles=nb_tiles, steps_per_core=steps_per_core,
            num_cores=num_cores, tile_rows=tile_rows,
            alpha=float(alpha), beta=float(beta),
            margin=float(margin), eps=float(eps), vmem_limit=vmem_limit))

    def _pack_live(self, model_params, head_params):
        nb_region, nh_region, total_rows, slab_dtype = self._pack_cfg
        return jnp.concatenate(
            [_region_slab(model_params, nb_region, slab_dtype),
             _region_slab(head_params, nh_region, slab_dtype),
             jnp.zeros((total_rows - nb_region - nh_region, _LANES), slab_dtype)],
            axis=0)

    def update_parameters(self, model_params, head_params):
        """Refresh the live-parameter slab after an optimizer step (training loops
        should ideally keep/update the flat slab directly to avoid this repack)."""
        self._cur_slab = self._pack_live(list(model_params), list(head_params))

    def __call__(self, anchor, positive, negative):
        total, dap, dan, l2sp = self._forward(anchor, positive, negative,
                                              self._cur_slab, self._pre_slab)
        # Logging with a device scalar: no .item()/float() -> no device->host sync.
        self.log("l2_sp", l2sp)
        return total, dap, dan


if __name__ == "__main__":
    key = jax.random.PRNGKey(0)
    k_a, k_p, k_n, k_w, k_w0, k_h = jax.random.split(key, 6)

    # Small embedding batch for the wrapped triplet loss.
    B, D = 8, 32
    anchor = jax.random.normal(k_a, (B, D), jnp.float32)
    positive = jax.random.normal(k_p, (B, D), jnp.float32)
    negative = jax.random.normal(k_n, (B, D), jnp.float32)

    # Synthetic "model": one conv weight (OIHW) shared with the pretrained
    # checkpoint, plus one new linear head weight.
    conv_w = jax.random.normal(k_w, (4, 4, 3, 3), jnp.float32) * 0.1
    conv_w_pre = conv_w + 0.05 * jax.random.normal(k_w0, (4, 4, 3, 3), jnp.float32)
    head_w = jax.random.normal(k_h, (10, 32), jnp.float32) * 0.1

    alpha, beta, margin, eps = 0.1, 0.01, 1.0, 1e-6
    wrapper = L2SPRegularizationWrapperPallas(
        model_params=[conv_w],
        pretrained_params=[conv_w_pre],
        head_params=[head_w],
        alpha=alpha,
        beta=beta,
        margin=margin,
        eps=eps,
    )

    total_loss, d_ap_mean, d_an_mean = wrapper(anchor, positive, negative)
    jax.block_until_ready((total_loss, d_ap_mean, d_an_mean))

    # Pure-JAX reference (torch-style eps: added per element before the norm).
    d_ap = jnp.sqrt(jnp.sum((anchor - positive + eps) ** 2, axis=-1))
    d_an = jnp.sqrt(jnp.sum((anchor - negative + eps) ** 2, axis=-1))
    std = jnp.mean(jnp.maximum(d_ap - d_an + margin, 0.0))
    l2sp_ref = alpha * jnp.sum((conv_w - conv_w_pre) ** 2) + beta * jnp.sum(head_w ** 2)

    assert jnp.allclose(total_loss, std + l2sp_ref, rtol=1e-5, atol=1e-5)
    assert jnp.allclose(d_ap_mean, jnp.mean(d_ap), rtol=1e-5, atol=1e-5)
    assert jnp.allclose(d_an_mean, jnp.mean(d_an), rtol=1e-5, atol=1e-5)

    print("KERNEL_OK")
</pallas_src>

<mosaic_0001>
module attributes {stable_mosaic.version = 11 : i64} {
  func.func @_l2sp_stream_kernel(%arg0: i32, %arg1: i32, %arg2: memref<8x128xf32, #tpu.memory_space<vmem>>, %arg3: memref<8x128xf32, #tpu.memory_space<vmem>>, %arg4: memref<8x128xf32, #tpu.memory_space<vmem>>, %arg5: memref<8x128xf32, #tpu.memory_space<vmem>>, %arg6: memref<8x128xf32, #tpu.memory_space<vmem>>) attributes {dimension_semantics = [#tpu.dimension_semantics<parallel>, #tpu.dimension_semantics<arbitrary>], iteration_bounds = array<i64: 1, 2>, scalar_prefetch = 0 : i64, scratch_operands = 2 : i64, tpu.core_type = #tpu.core_type<tc>, window_params = [{transform_indices = @transform_0, window_bounds = array<i64: 8, 128>}, {transform_indices = @transform_1, window_bounds = array<i64: 8, 128>}, {transform_indices = @transform_2, window_bounds = array<i64: 8, 128>}]} {
    %c0_i32 = arith.constant 0 : i32
    %0 = arith.cmpi eq, %arg1, %c0_i32 : i32
    %1 = arith.extui %0 : i1 to i32
    %c0_i32_0 = arith.constant 0 : i32
    %2 = arith.cmpi ne, %1, %c0_i32_0 : i32
    scf.if %2 {
      %cst_9 = arith.constant 0.000000e+00 : f32
      %20 = vector.broadcast %cst_9 : f32 to vector<8x128xf32>
      %c0_10 = arith.constant 0 : index
      %c0_11 = arith.constant 0 : index
      %21 = vector.load %arg5[%c0_10, %c0_11] : memref<8x128xf32, #tpu.memory_space<vmem>>, vector<8x128xf32>
      tpu.vector_store %arg5[%c0_10, %c0_11], %20 {strides = array<i32>} : memref<8x128xf32, #tpu.memory_space<vmem>>, vector<8x128xf32>,
      %cst_12 = arith.constant 0.000000e+00 : f32
      %22 = vector.broadcast %cst_12 : f32 to vector<8x128xf32>
      %c0_13 = arith.constant 0 : index
      %c0_14 = arith.constant 0 : index
      %23 = vector.load %arg6[%c0_13, %c0_14] : memref<8x128xf32, #tpu.memory_space<vmem>>, vector<8x128xf32>
      tpu.vector_store %arg6[%c0_13, %c0_14], %22 {strides = array<i32>} : memref<8x128xf32, #tpu.memory_space<vmem>>, vector<8x128xf32>,
    } else {
    }
    %c0 = arith.constant 0 : index
    %c0_1 = arith.constant 0 : index
    %3 = vector.load %arg2[%c0, %c0_1] : memref<8x128xf32, #tpu.memory_space<vmem>>, vector<8x128xf32>
    %c0_2 = arith.constant 0 : index
    %c0_3 = arith.constant 0 : index
    %4 = vector.load %arg3[%c0_2, %c0_3] : memref<8x128xf32, #tpu.memory_space<vmem>>, vector<8x128xf32>
    %5 = arith.subf %3, %4 : vector<8x128xf32>
    %6 = arith.mulf %5, %5 : vector<8x128xf32>
    %7 = vector.shape_cast %6 : vector<8x128xf32> to vector<1x8x128xf32>
    %cst = arith.constant dense<0.000000e+00> : vector<8x128xf32>
    %8 = vector.multi_reduction <add>, %7, %cst [0] : vector<1x8x128xf32> to vector<8x128xf32>
    %c2_i32 = arith.constant 2 : i32
    %9 = arith.muli %arg0, %c2_i32 : i32
    %10 = arith.addi %9, %arg1 : i32
    %c1_i32 = arith.constant 1 : i32
    %11 = arith.cmpi slt, %10, %c1_i32 : i32
    %12 = arith.extui %11 : i1 to i32
    %c0_i32_4 = arith.constant 0 : i32
    %13 = arith.cmpi ne, %12, %c0_i32_4 : i32
    scf.if %13 {
      %c0_9 = arith.constant 0 : index
      %c0_10 = arith.constant 0 : index
      %20 = vector.load %arg5[%c0_9, %c0_10] : memref<8x128xf32, #tpu.memory_space<vmem>>, vector<8x128xf32>
      %21 = arith.addf %20, %8 : vector<8x128xf32>
      %c0_11 = arith.constant 0 : index
      %c0_12 = arith.constant 0 : index
      %22 = vector.load %arg5[%c0_11, %c0_12] : memref<8x128xf32, #tpu.memory_space<vmem>>, vector<8x128xf32>
      tpu.vector_store %arg5[%c0_11, %c0_12], %21 {strides = array<i32>} : memref<8x128xf32, #tpu.memory_space<vmem>>, vector<8x128xf32>,
    } else {
    }
    %c1_i32_5 = arith.constant 1 : i32
    %14 = arith.cmpi sge, %10, %c1_i32_5 : i32
    %15 = arith.extui %14 : i1 to i32
    %c0_i32_6 = arith.constant 0 : i32
    %16 = arith.cmpi ne, %15, %c0_i32_6 : i32
    scf.if %16 {
      %c0_9 = arith.constant 0 : index
      %c0_10 = arith.constant 0 : index
      %20 = vector.load %arg6[%c0_9, %c0_10] : memref<8x128xf32, #tpu.memory_space<vmem>>, vector<8x128xf32>
      %21 = arith.addf %20, %8 : vector<8x128xf32>
      %c0_11 = arith.constant 0 : index
      %c0_12 = arith.constant 0 : index
      %22 = vector.load %arg6[%c0_11, %c0_12] : memref<8x128xf32, #tpu.memory_space<vmem>>, vector<8x128xf32>
      tpu.vector_store %arg6[%c0_11, %c0_12], %21 {strides = array<i32>} : memref<8x128xf32, #tpu.memory_space<vmem>>, vector<8x128xf32>,
    } else {
    }
    %c1_i32_7 = arith.constant 1 : i32
    %17 = arith.cmpi eq, %arg1, %c1_i32_7 : i32
    %18 = arith.extui %17 : i1 to i32
    %c0_i32_8 = arith.constant 0 : i32
    %19 = arith.cmpi ne, %18, %c0_i32_8 : i32
    scf.if %19 {
      %c0_9 = arith.constant 0 : index
      %c0_10 = arith.constant 0 : index
      %20 = vector.load %arg5[%c0_9, %c0_10] : memref<8x128xf32, #tpu.memory_space<vmem>>, vector<8x128xf32>
      %21 = vector.shape_cast %20 : vector<8x128xf32> to vector<1x8x128xf32>
      %cst_11 = arith.constant dense<0.000000e+00> : vector<1xf32>
      %22 = vector.multi_reduction <add>, %21, %cst_11 [1, 2] : vector<1x8x128xf32> to vector<1xf32>
      %23 = vector.shape_cast %22 : vector<1xf32> to vector<1x1x1xf32>
      %24 = vector.extract %23[0, 0, 0] : f32 from vector<1x1x1xf32>
      %c0_12 = arith.constant 0 : index
      %c0_13 = arith.constant 0 : index
      %25 = vector.load %arg6[%c0_12, %c0_13] : memref<8x128xf32, #tpu.memory_space<vmem>>, vector<8x128xf32>
      %26 = vector.shape_cast %25 : vector<8x128xf32> to vector<1x8x128xf32>
      %cst_14 = arith.constant dense<0.000000e+00> : vector<1xf32>
      %27 = vector.multi_reduction <add>, %26, %cst_14 [1, 2] : vector<1x8x128xf32> to vector<1xf32>
      %28 = vector.shape_cast %27 : vector<1xf32> to vector<1x1x1xf32>
      %29 = vector.extract %28[0, 0, 0] : f32 from vector<1x1x1xf32>
      %30 = tpu.iota {dimensions = array<i32: 1>} : vector<8x128xi32>
      %c0_i32_15 = arith.constant 0 : i32
      %31 = vector.broadcast %c0_i32_15 : i32 to vector<8x128xi32>
      %32 = arith.cmpi eq, %30, %31 : vector<8x128xi32>
      %cst_16 = arith.constant 0.000000e+00 : f32
      %33 = vector.broadcast %24 : f32 to vector<8x128xf32>
      %34 = vector.broadcast %cst_16 : f32 to vector<8x128xf32>
      %35 = arith.select %32, %33, %34 : vector<8x128xi1>, vector<8x128xf32>
      %c1_i32_17 = arith.constant 1 : i32
      %36 = vector.broadcast %c1_i32_17 : i32 to vector<8x128xi32>
      %37 = arith.cmpi eq, %30, %36 : vector<8x128xi32>
      %cst_18 = arith.constant 0.000000e+00 : f32
      %38 = vector.broadcast %29 : f32 to vector<8x128xf32>
      %39 = vector.broadcast %cst_18 : f32 to vector<8x128xf32>
      %40 = arith.select %37, %38, %39 : vector<8x128xi1>, vector<8x128xf32>
      %41 = arith.addf %35, %40 : vector<8x128xf32>
      %c0_19 = arith.constant 0 : index
      %c0_20 = arith.constant 0 : index
      %42 = vector.load %arg4[%c0_19, %c0_20] : memref<8x128xf32, #tpu.memory_space<vmem>>, vector<8x128xf32>
      tpu.vector_store %arg4[%c0_19, %c0_20], %41 {strides = array<i32>} : memref<8x128xf32, #tpu.memory_space<vmem>>, vector<8x128xf32>,
    } else {
    }
    return
  }
  func.func @transform_0(%arg0: i32, %arg1: i32) -> (i32, i32) {
    %c2_i32 = arith.constant 2 : i32
    %0 = arith.muli %arg0, %c2_i32 : i32
    %1 = arith.addi %0, %arg1 : i32
    %c0_i32 = arith.constant 0 : i32
    %c0_i32_0 = arith.constant 0 : i32
    return %1, %c0_i32 : i32, i32
  }
  func.func @transform_1(%arg0: i32, %arg1: i32) -> (i32, i32) {
    %c2_i32 = arith.constant 2 : i32
    %0 = arith.muli %arg0, %c2_i32 : i32
    %1 = arith.addi %0, %arg1 : i32
    %c0_i32 = arith.constant 0 : i32
    %c0_i32_0 = arith.constant 0 : i32
    return %1, %c0_i32 : i32, i32
  }
  func.func @transform_2(%arg0: i32, %arg1: i32) -> (i32, i32) {
    %c0_i32 = arith.constant 0 : i32
    %c0_i32_0 = arith.constant 0 : i32
    return %arg0, %c0_i32 : i32, i32
  }
}

module attributes {stable_mosaic.version = 11 : i64} {
  func.func @_triplet_kernel(%arg0: i32, %arg1: memref<8x128xf32, #tpu.memory_space<vmem>>, %arg2: memref<8x128xf32, #tpu.memory_space<vmem>>, %arg3: memref<8x128xf32, #tpu.memory_space<vmem>>, %arg4: memref<8x128xf32, #tpu.memory_space<vmem>>, %arg5: memref<8x128xf32, #tpu.memory_space<vmem>>) attributes {dimension_semantics = [#tpu.dimension_semantics<arbitrary>], iteration_bounds = array<i64: 1>, scalar_prefetch = 0 : i64, scratch_operands = 1 : i64, tpu.core_type = #tpu.core_type<tc>, window_params = [{transform_indices = @transform_0, window_bounds = array<i64: 8, 128>}, {transform_indices = @transform_1, window_bounds = array<i64: 8, 128>}, {transform_indices = @transform_2, window_bounds = array<i64: 8, 128>}, {pipeline_mode = #tpu.pipeline_mode<synchronous>, transform_indices = @transform_3, window_bounds = array<i64: 8, 128>}]} {
    %c0_i32 = arith.constant 0 : i32
    %0 = arith.cmpi eq, %arg0, %c0_i32 : i32
    %1 = arith.extui %0 : i1 to i32
    %c0_i32_0 = arith.constant 0 : i32
    %2 = arith.cmpi ne, %1, %c0_i32_0 : i32
    scf.if %2 {
      %cst_30 = arith.constant 0.000000e+00 : f32
      %80 = vector.broadcast %cst_30 : f32 to vector<8x128xf32>
      %c0_31 = arith.constant 0 : index
      %c0_32 = arith.constant 0 : index
      %81 = vector.load %arg5[%c0_31, %c0_32] : memref<8x128xf32, #tpu.memory_space<vmem>>, vector<8x128xf32>
      tpu.vector_store %arg5[%c0_31, %c0_32], %80 {strides = array<i32>} : memref<8x128xf32, #tpu.memory_space<vmem>>, vector<8x128xf32>,
    } else {
    }
    %c0 = arith.constant 0 : index
    %c0_1 = arith.constant 0 : index
    %3 = vector.load %arg1[%c0, %c0_1] : memref<8x128xf32, #tpu.memory_space<vmem>>, vector<8x128xf32>
    %c0_2 = arith.constant 0 : index
    %c0_3 = arith.constant 0 : index
    %4 = vector.load %arg2[%c0_2, %c0_3] : memref<8x128xf32, #tpu.memory_space<vmem>>, vector<8x128xf32>
    %c0_4 = arith.constant 0 : index
    %c0_5 = arith.constant 0 : index
    %5 = vector.load %arg3[%c0_4, %c0_5] : memref<8x128xf32, #tpu.memory_space<vmem>>, vector<8x128xf32>
    %6 = tpu.iota {dimensions = array<i32: 1>} : vector<8x128xi32>
    %c32_i32 = arith.constant 32 : i32
    %7 = vector.broadcast %c32_i32 : i32 to vector<8x128xi32>
    %8 = arith.cmpi slt, %6, %7 : vector<8x128xi32>
    %9 = arith.subf %3, %4 : vector<8x128xf32>
    %cst = arith.constant 9.99999997E-7 : f32
    %10 = vector.broadcast %cst : f32 to vector<8x128xf32>
    %11 = arith.addf %9, %10 : vector<8x128xf32>
    %cst_6 = arith.constant 0.000000e+00 : f32
    %12 = vector.broadcast %cst_6 : f32 to vector<8x128xf32>
    %13 = arith.select %8, %11, %12 : vector<8x128xi1>, vector<8x128xf32>
    %14 = arith.subf %3, %5 : vector<8x128xf32>
    %cst_7 = arith.constant 9.99999997E-7 : f32
    %15 = vector.broadcast %cst_7 : f32 to vector<8x128xf32>
    %16 = arith.addf %14, %15 : vector<8x128xf32>
    %cst_8 = arith.constant 0.000000e+00 : f32
    %17 = vector.broadcast %cst_8 : f32 to vector<8x128xf32>
    %18 = arith.select %8, %16, %17 : vector<8x128xi1>, vector<8x128xf32>
    %19 = arith.mulf %13, %13 : vector<8x128xf32>
    %cst_9 = arith.constant dense<0.000000e+00> : vector<8xf32>
    %20 = vector.multi_reduction <add>, %19, %cst_9 [1] : vector<8x128xf32> to vector<8xf32>
    %21 = vector.shape_cast %20 : vector<8xf32> to vector<8x1xf32>
    %22 = math.sqrt %21 : vector<8x1xf32>
    %23 = arith.mulf %18, %18 : vector<8x128xf32>
    %cst_10 = arith.constant dense<0.000000e+00> : vector<8xf32>
    %24 = vector.multi_reduction <add>, %23, %cst_10 [1] : vector<8x128xf32> to vector<8xf32>
    %25 = vector.shape_cast %24 : vector<8xf32> to vector<8x1xf32>
    %26 = math.sqrt %25 : vector<8x1xf32>
    %c8_i32 = arith.constant 8 : i32
    %27 = arith.muli %arg0, %c8_i32 : i32
    %28 = tpu.iota {dimensions = array<i32: 0>} : vector<8x1xi32>
    %29 = vector.broadcast %27 : i32 to vector<8x1xi32>
    %30 = arith.addi %29, %28 : vector<8x1xi32>
    %c8_i32_11 = arith.constant 8 : i32
    %31 = vector.broadcast %c8_i32_11 : i32 to vector<8x1xi32>
    %32 = arith.cmpi slt, %30, %31 : vector<8x1xi32>
    %33 = arith.subf %22, %26 : vector<8x1xf32>
    %cst_12 = arith.constant 1.000000e+00 : f32
    %34 = vector.broadcast %cst_12 : f32 to vector<8x1xf32>
    %35 = arith.addf %33, %34 : vector<8x1xf32>
    %cst_13 = arith.constant 0.000000e+00 : f32
    %36 = vector.broadcast %cst_13 : f32 to vector<8x1xf32>
    %37 = arith.maximumf %35, %36 : vector<8x1xf32>
    %cst_14 = arith.constant 0.000000e+00 : f32
    %38 = vector.broadcast %cst_14 : f32 to vector<8x1xf32>
    %39 = arith.select %32, %37, %38 : vector<8x1xi1>, vector<8x1xf32>
    %40 = vector.shape_cast %39 : vector<8x1xf32> to vector<1x8x1xf32>
    %cst_15 = arith.constant dense<0.000000e+00> : vector<1xf32>
    %41 = vector.multi_reduction <add>, %40, %cst_15 [1, 2] : vector<1x8x1xf32> to vector<1xf32>
    %42 = vector.shape_cast %41 : vector<1xf32> to vector<1x1x1xf32>
    %43 = vector.extract %42[0, 0, 0] : f32 from vector<1x1x1xf32>
    %cst_16 = arith.constant 0.000000e+00 : f32
    %44 = vector.broadcast %cst_16 : f32 to vector<8x1xf32>
    %45 = arith.select %32, %22, %44 : vector<8x1xi1>, vector<8x1xf32>
    %46 = vector.shape_cast %45 : vector<8x1xf32> to vector<1x8x1xf32>
    %cst_17 = arith.constant dense<0.000000e+00> : vector<1xf32>
    %47 = vector.multi_reduction <add>, %46, %cst_17 [1, 2] : vector<1x8x1xf32> to vector<1xf32>
    %48 = vector.shape_cast %47 : vector<1xf32> to vector<1x1x1xf32>
    %49 = vector.extract %48[0, 0, 0] : f32 from vector<1x1x1xf32>
    %cst_18 = arith.constant 0.000000e+00 : f32
    %50 = vector.broadcast %cst_18 : f32 to vector<8x1xf32>
    %51 = arith.select %32, %26, %50 : vector<8x1xi1>, vector<8x1xf32>
    %52 = vector.shape_cast %51 : vector<8x1xf32> to vector<1x8x1xf32>
    %cst_19 = arith.constant dense<0.000000e+00> : vector<1xf32>
    %53 = vector.multi_reduction <add>, %52, %cst_19 [1, 2] : vector<1x8x1xf32> to vector<1xf32>
    %54 = vector.shape_cast %53 : vector<1xf32> to vector<1x1x1xf32>
    %55 = vector.extract %54[0, 0, 0] : f32 from vector<1x1x1xf32>
    %56 = tpu.iota {dimensions = array<i32: 1>} : vector<8x128xi32>
    %c0_20 = arith.constant 0 : index
    %c0_21 = arith.constant 0 : index
    %57 = vector.load %arg5[%c0_20, %c0_21] : memref<8x128xf32, #tpu.memory_space<vmem>>, vector<8x128xf32>
    %c0_i32_22 = arith.constant 0 : i32
    %58 = vector.broadcast %c0_i32_22 : i32 to vector<8x128xi32>
    %59 = arith.cmpi eq, %56, %58 : vector<8x128xi32>
    %cst_23 = arith.constant 0.000000e+00 : f32
    %60 = vector.broadcast %43 : f32 to vector<8x128xf32>
    %61 = vector.broadcast %cst_23 : f32 to vector<8x128xf32>
    %62 = arith.select %59, %60, %61 : vector<8x128xi1>, vector<8x128xf32>
    %c1_i32 = arith.constant 1 : i32
    %63 = vector.broadcast %c1_i32 : i32 to vector<8x128xi32>
    %64 = arith.cmpi eq, %56, %63 : vector<8x128xi32>
    %cst_24 = arith.constant 0.000000e+00 : f32
    %65 = vector.broadcast %49 : f32 to vector<8x128xf32>
    %66 = vector.broadcast %cst_24 : f32 to vector<8x128xf32>
    %67 = arith.select %64, %65, %66 : vector<8x128xi1>, vector<8x128xf32>
    %68 = arith.addf %62, %67 : vector<8x128xf32>
    %c2_i32 = arith.constant 2 : i32
    %69 = vector.broadcast %c2_i32 : i32 to vector<8x128xi32>
    %70 = arith.cmpi eq, %56, %69 : vector<8x128xi32>
    %cst_25 = arith.constant 0.000000e+00 : f32
    %71 = vector.broadcast %55 : f32 to vector<8x128xf32>
    %72 = vector.broadcast %cst_25 : f32 to vector<8x128xf32>
    %73 = arith.select %70, %71, %72 : vector<8x128xi1>, vector<8x128xf32>
    %74 = arith.addf %68, %73 : vector<8x128xf32>
    %75 = arith.addf %57, %74 : vector<8x128xf32>
    %c0_26 = arith.constant 0 : index
    %c0_27 = arith.constant 0 : index
    %76 = vector.load %arg5[%c0_26, %c0_27] : memref<8x128xf32, #tpu.memory_space<vmem>>, vector<8x128xf32>
    tpu.vector_store %arg5[%c0_26, %c0_27], %75 {strides = array<i32>} : memref<8x128xf32, #tpu.memory_space<vmem>>, vector<8x128xf32>,
    %c0_i32_28 = arith.constant 0 : i32
    %77 = arith.cmpi eq, %arg0, %c0_i32_28 : i32
    %78 = arith.extui %77 : i1 to i32
    %c0_i32_29 = arith.constant 0 : i32
    %79 = arith.cmpi ne, %78, %c0_i32_29 : i32
    scf.if %79 {
      %c0_30 = arith.constant 0 : index
      %c0_31 = arith.constant 0 : index
      %80 = vector.load %arg5[%c0_30, %c0_31] : memref<8x128xf32, #tpu.memory_space<vmem>>, vector<8x128xf32>
      %c0_32 = arith.constant 0 : index
      %c0_33 = arith.constant 0 : index
      %81 = vector.load %arg4[%c0_32, %c0_33] : memref<8x128xf32, #tpu.memory_space<vmem>>, vector<8x128xf32>
      tpu.vector_store %arg4[%c0_32, %c0_33], %80 {strides = array<i32>} : memref<8x128xf32, #tpu.memory_space<vmem>>, vector<8x128xf32>,
    } else {
    }
    return
  }
  func.func @transform_0(%arg0: i32) -> (i32, i32) {
    %c0_i32 = arith.constant 0 : i32
    %c0_i32_0 = arith.constant 0 : i32
    return %arg0, %c0_i32 : i32, i32
  }
  func.func @transform_1(%arg0: i32) -> (i32, i32) {
    %c0_i32 = arith.constant 0 : i32
    %c0_i32_0 = arith.constant 0 : i32
    return %arg0, %c0_i32 : i32, i32
  }
  func.func @transform_2(%arg0: i32) -> (i32, i32) {
    %c0_i32 = arith.constant 0 : i32
    %c0_i32_0 = arith.constant 0 : i32
    return %arg0, %c0_i32 : i32, i32
  }
  func.func @transform_3(%arg0: i32) -> (i32, i32) {
    %c0_i32 = arith.constant 0 : i32
    %c0_i32_0 = arith.constant 0 : i32
    %c0_i32_1 = arith.constant 0 : i32
    return %c0_i32, %c0_i32_0 : i32, i32
  }
}

</mosaic_0001>

<bundles_post_ra>
// kernel: _forward_impl.3
= control target key start
LH: loop header
LB: loop body
LE: loop exit
PB: predicated region body
PF: predicated region fallthrough
CT: control target
= control target key end

     0   :  { %v22_v0 = vlaneseq  ;;  %vm61_vm5 = vcmask 7168   ;;  %s165_s0 = inlined_call_operand.vmem [shape: f32[8,128], index: 0, kind: input, shape index: {}]   ;;  %s166_s1 = inlined_call_operand.vmem [shape: f32[8,128], index: 1, kind: input, shape index: {}]   ;;  %s167_s2 = inlined_call_operand.vmem [shape: f32[8,128], index: 2, kind: input, shape index: {}]   ;;  %s168_s3 = inlined_call_operand.vmem [shape: f32[8,128], index: 3, kind: output, shape index: {}]  }
   0x1   :  { %v19_v1 = vld [vmem:[%s165_s0] sm:$0xff] }
   0x2   :  { %v20_v2 = vld [vmem:[%s166_s1] sm:$0xff]  ;;  %v156_v4 = vand.u32 127, %v22_v0 }
   0x3   :  { %v21_v3 = vld [vmem:[%s167_s2] sm:$0xff]  ;;  %v25_v5 = vsub.f32 %v19_v1, %v20_v2 }
   0x4   :  { %v28_v6 = vsub.f32 %v19_v1, %v21_v3  ;;  %vm24_vm0 = vcmp.lt.s32.totalorder %v156_v4, 32  ;;  %vm95_vm6 = vcmp.eq.s32.totalorder %v156_v4, 0  ;;  %vm98_vm7 = vcmp.eq.s32.totalorder %v156_v4, 1 }
   0x5   :  { %v26_v7 = vadd.f32 1e-06, %v25_v5  ;;  %vm102_vm8 = vcmp.eq.s32.totalorder %v156_v4, 2 }
   0x6   :  { %v29_v8 = vadd.f32 1e-06, %v28_v6 }
   0x7   :  { %v27_v9 = vsel %vm24_vm0, %v26_v7, 0.0 }
   0x8   :  { %v30_v10 = vsel %vm24_vm0, %v29_v8, 0.0  ;;  %v31_v11 = vmul.f32 %v27_v9, %v27_v9 }
   0x9   :  { %v41_v12 = vmul.f32 %v30_v10, %v30_v10 }
   0xa   :  { %32 = vadd.xlane.f32.xlu0 %v31_v11 }
   0xe   :  { %42 = vadd.xlane.f32.xlu0 %v41_v12 }
  0x93   :  { %v33_v13 = vpop.xlane.xlu0 %32 }
  0x94   :  { %123 = vrsqrt.f32 %v33_v13  ;;  %vm36_vm1 = vcmp.eq.f32.partialorder %v33_v13, inf  ;;  %v39_v20 = vand.u32 2147483648, %v33_v13  ;;  %vm38_vm3 = vcmp.eq.f32.partialorder %v33_v13, 0.0 }
  0x97   :  { %v43_v14 = vpop.xlane.xlu0 %42 }
  0x98   :  { %125 = vrsqrt.f32 %v43_v14  ;;  %vm46_vm2 = vcmp.eq.f32.partialorder %v43_v14, inf  ;;  %v49_v21 = vand.u32 2147483648, %v43_v14  ;;  %vm48_vm4 = vcmp.eq.f32.partialorder %v43_v14, 0.0 }
  0xa1   :  { %v124_v15 = vpop.eup %123 }
  0xa2   :  { %v35_v16 = vmul.f32 %v124_v15, %v33_v13 }
  0xa4   :  { %v37_v18 = vsel %vm36_vm1, %v33_v13, %v35_v16 }
  0xa5   :  { %v126_v17 = vpop.eup %125  ;;  %v40_v23 = vsel %vm38_vm3, %v39_v20, %v37_v18 }
  0xa6   :  { %v45_v19 = vmul.f32 %v126_v17, %v43_v14  ;;  %v73_v30 = vsel %vm61_vm5, %v40_v23, 0.0 }
  0xa8   :  { %v47_v22 = vsel %vm46_vm2, %v43_v14, %v45_v19 }
  0xa9   :  { %v50_v24 = vsel %vm48_vm4, %v49_v21, %v47_v22 }
  0xaa   :  { %v84_v25 = vsel %vm61_vm5, %v50_v24, 0.0  ;;  %v57_v26 = vsub.f32 %v40_v23, %v50_v24 }
  0xab   :  { %85 = vadd.xlane.f32.xlu0 %v84_v25 }
  0xac   :  { %v58_v27 = vadd.f32 1.0, %v57_v26 }
  0xae   :  { %v59_v28 = vmax.f32 %v58_v27, 0.0 }
  0xb0   :  { %v62_v29 = vsel %vm61_vm5, %v59_v28, 0.0 }
  0xb1   :  { %63 = vadd.xlane.f32.xlu1 %v62_v29 }
  0xb5   :  { %74 = vadd.xlane.f32.xlu1 %v73_v30 }
 0x134   :  { %v86_v31 = vpop.xlane.xlu0 %85 }
 0x135   :  { %v87_v32 = vrot.slane %v86_v31, 4 }
 0x137   :  { %v88_v33 = vadd.f32 %v87_v32, %v86_v31 }
 0x139   :  { %v89_v37 = vrot.slane %v88_v33, 2 }
 0x13a   :  { %v64_v34 = vpop.xlane.xlu1 %63 }
 0x13b   :  { %v65_v35 = vrot.slane %v64_v34, 4  ;;  %v90_v43 = vadd.f32 %v89_v37, %v88_v33 }
 0x13d   :  { %v66_v36 = vadd.f32 %v65_v35, %v64_v34  ;;  %v91_v48 = vrot.slane %v90_v43, 1 }
 0x13e   :  { %v75_v38 = vpop.xlane.xlu1 %74 }
 0x13f   :  { %v67_v39 = vrot.slane %v66_v36, 2  ;;  %v76_v40 = vrot.slane %v75_v38, 4  ;;  %v92_v51 = vadd.f32 %v91_v48, %v90_v43 }
 0x141   :  { %v77_v41 = vadd.f32 %v76_v40, %v75_v38  ;;  %v68_v42 = vadd.f32 %v67_v39, %v66_v36 }
 0x143   :  { %v78_v44 = vrot.slane %v77_v41, 2  ;;  %v69_v45 = vrot.slane %v68_v42, 1 }
 0x145   :  { %v79_v46 = vadd.f32 %v78_v44, %v77_v41  ;;  %v70_v47 = vadd.f32 %v69_v45, %v68_v42 }
 0x147   :  { %117 = vpush %v70_v47  ;;  %v80_v49 = vrot.slane %v79_v46, 1 }
 0x149   :  { %v81_v50 = vadd.f32 %v80_v49, %v79_v46 }
 0x14b   :  { %119 = vpush %v81_v50 }
 0x14c   :  { %121 = vpush %v92_v51 }
 0x178   :  { %s118_s0 = spop %117 }
 0x179   :  { %v96_v52 = vstv %s118_s0 }
 0x17a   :  { %v97_v54 = vsel %vm95_vm6, %v96_v52, 0.0 }
 0x17c   :  { %s120_s1 = spop %119 }
 0x17d   :  { %v99_v53 = vstv %s120_s1  ;;  %s122_s2 = spop %121 }
 0x17e   :  { %v100_v55 = vsel %vm98_vm7, %v99_v53, 0.0  ;;  %v103_v56 = vstv %s122_s2 }
 0x17f   :  { %v101_v57 = vadd.f32 %v100_v55, %v97_v54  ;;  %v104_v58 = vsel %vm102_vm8, %v103_v56, 0.0 }
 0x181   :  { %v105_v59 = vadd.f32 %v104_v58, %v101_v57 }
 0x183   :  { %112 = vst [vmem:[%s168_s3] sm:$0xff] %v105_v59 }

// kernel: _forward_impl.2
= control target key start
LH: loop header
LB: loop body
LE: loop exit
PB: predicated region body
PF: predicated region fallthrough
CT: control target
= control target key end

     0   :  { %s410_s9 = smov 0   ;;  %s412_s10 = smov 0   ;;  %s457_s0 = inlined_call_operand.vmem [shape: f32[16,128], index: 0, kind: input, shape index: {}]   ;;  %s458_s1 = inlined_call_operand.vmem [shape: f32[16,128], index: 1, kind: input, shape index: {}]   ;;  %s459_s2 = inlined_call_operand.vmem [shape: f32[8,128], index: 2, kind: output, shape index: {}]  }
   0x1   :  { %s414_s11 = smov 0  }
   0x2 LB: > { %s21_s12 = sadd.s32 1, %s388_s10  ;;  %p331_p0 = scmp.ge.s32.totalorder %s392_s11, 1  ;;  %s392_s11 = sphi %s414_s11, %s12_s11   ;;  %s388_s10 = sphi %s412_s10, %s461_s10   ;;  %s384_s9 = sphi %s410_s9, %s460_s9  }
   0x3   : > { %p22_p1 = scmp.ge.s32.totalorder %s21_s12, 2  ;;  %p148_p2 = scmp.lt.s32.totalorder %s392_s11, 3 }
   0x5   : > { %s463_s12 = smov (%p22_p1, %s21_s12), 0  ;;  %p149_p3 = pnand %p331_p0, %p148_p2 }
   0x6   : > { %p178_p4 = scmp.lt.s32.totalorder (!%p149_p3), %s384_s9, 1  ;;  %p334_p5 = scmp.ne.s32.totalorder (!%p149_p3), %s384_s9, 0 }
   0x7   : > { %152 = sbr.rel (%p149_p3) target bundleno = 257 (0x101), region = 28 }
   0xc   : > { %s179_s13 = scalar_select %p178_p4, %s384_s9, 1 }
   0xd   : > { %199 = sbr.rel (%p334_p5) target bundleno = 20 (0x14), region = 32 }
   0xe   : > { %s332_s14 = sshll.u32 %s179_s13, 3 }
   0xf   : > { %s181_s17 = scalar_lea.vmem %s457_s0, %s332_s14  ;;  %s189_s20 = scalar_lea.vmem %s458_s1, %s332_s14 }
  0x12   : > { %v394_v0 = vmov 0.0  }
  0x13   : > { %200 = vst [vmem:[#allocation2] sm:$0xff] %v394_v0  ;;  %201 = vst [vmem:[#allocation3] sm:$0xff] %v394_v0 }
  0x14 PF: > { %v202_v1 = vld [vmem:[%s181_s17] sm:$0xff]  ;;  %p335_p6 = scmp.ge.s32.totalorder %s384_s9, 1 }
  0x15   : > { %v203_v2 = vld [vmem:[%s189_s20] sm:$0xff] }
  0x16   : > { %v204_v3 = vsub.f32 %v202_v1, %v203_v2  ;;  %212 = sbr.rel (%p335_p6) target bundleno = 31 (0x1f), region = 36 }
  0x18   : > { %v205_v4 = vmul.f32 %v204_v3, %v204_v3 }
  0x1b   : > { %v213_v5 = vld [vmem:[#allocation2] sm:$0xff] }
  0x1c   : > { %v214_v6 = vadd.f32 %v213_v5, %v205_v4 }
  0x1e   : > { %215 = vst [vmem:[#allocation2] sm:$0xff] %v214_v6 }
  0x1f PF: > { %219 = sbr.rel (%p178_p4) target bundleno = 40 (0x28), region = 40 }
  0x24   : > { %v220_v7 = vld [vmem:[#allocation3] sm:$0xff] }
  0x25   : > { %v221_v8 = vadd.f32 %v220_v7, %v205_v4 }
  0x27   : > { %222 = vst [vmem:[#allocation3] sm:$0xff] %v221_v8 }
  0x28 PF: > { %p337_p7 = scmp.ne.s32.totalorder %s384_s9, 1 }
  0x2a   : > { %226 = sbr.rel (%p337_p7) target bundleno = 257 (0x101), region = 44 }
  0x2f   : > { %v227_v9 = vld [vmem:[#allocation2] sm:$0xff]  ;;  %v237_v10 = vld [vmem:[#allocation3] sm:$0xff]  ;;  %v247_v25 = vlaneseq }
  0x30   : > { %228 = vadd.xlane.f32.xlu0 %v227_v9 }
  0x31   : > { %v248_v26 = vand.u32 127, %v247_v25 }
  0x33   : > { %vm249_vm0 = vcmp.eq.s32.totalorder %v248_v26, 0  ;;  %vm252_vm1 = vcmp.eq.s32.totalorder %v248_v26, 1 }
  0x34   : > { %238 = vadd.xlane.f32.xlu0 %v237_v10 }
  0xb9   : > { %v229_v11 = vpop.xlane.xlu0 %228 }
  0xba   : > { %v230_v12 = vrot.slane %v229_v11, 4 }
  0xbc   : > { %v231_v13 = vadd.f32 %v230_v12, %v229_v11 }
  0xbd   : > { %v239_v14 = vpop.xlane.xlu0 %238 }
  0xbe   : > { %v232_v15 = vrot.slane %v231_v13, 2  ;;  %v240_v16 = vrot.slane %v239_v14, 4 }
  0xc0   : > { %v241_v17 = vadd.f32 %v240_v16, %v239_v14  ;;  %v233_v18 = vadd.f32 %v232_v15, %v231_v13 }
  0xc2   : > { %v242_v19 = vrot.slane %v241_v17, 2  ;;  %v234_v20 = vrot.slane %v233_v18, 1 }
  0xc4   : > { %v243_v21 = vadd.f32 %v242_v19, %v241_v17  ;;  %v235_v22 = vadd.f32 %v234_v20, %v233_v18 }
  0xc6   : > { %341 = vpush %v235_v22  ;;  %v244_v23 = vrot.slane %v243_v21, 1 }
  0xc8   : > { %v245_v24 = vadd.f32 %v244_v23, %v243_v21 }
  0xca   : > { %343 = vpush %v245_v24 }
  0xf7   : > { %s342_s21 = spop %341 }
  0xf8   : > { %v250_v27 = vstv %s342_s21 }
  0xf9   : > { %v251_v29 = vsel %vm249_vm0, %v250_v27, 0.0 }
  0xfb   : > { %s344_s22 = spop %343 }
  0xfc   : > { %v253_v28 = vstv %s344_s22 }
  0xfd   : > { %v254_v30 = vsel %vm252_vm1, %v253_v28, 0.0 }
  0xfe   : > { %v255_v31 = vadd.f32 %v254_v30, %v251_v29 }
 0x100   : > { %256 = vst [vmem:[%s459_s2] sm:$0xff] %v255_v31 }
 0x101 PF: > { %s12_s11 = sadd.s32 1, %s392_s11   ;;  %s460_s9 = smov %s388_s10 }
 0x102   : > { %p9_p8 = scmp.ge.s32.totalorder %s12_s11, 4   ;;  %s461_s10 = smov %s463_s12 }
 0x104   :  { %11 = sbr.rel (!%p9_p8) target bundleno = 2 (0x2), region = 77 }

</bundles_post_ra>
